<compile_context>
chip_gen: v7x
topology: tpu7x:2x2x1
jax: 0.10.0
libtpu: 0.0.40
codegen_flags: <defaults>
</compile_context>

<pallas_src>
import functools
import math

import jax
import jax.numpy as jnp
from jax.experimental import pallas as pl
from jax.experimental.pallas import tpu as pltpu


def _ls_loss_kernel(out_ref, tgt_ref, loss_ref, acc_ref, *,
                    confidence, smooth, padding_idx, const_term, deferred):
    """One (batch-tile, vocab-tile) step of the smoothed-KL loss.

    out_ref : (tb, tv)  log-probability tile (native dtype)
    tgt_ref : (tb, 1)   int32 target ids (resident across vocab steps)
    loss_ref: (tb, 1)   final per-row loss (written at last vocab step)
    acc_ref : (tb, 128) or (tb, 1) f32 running partial sums
    """
    k = pl.program_id(1)

    @pl.when(k == 0)
    def _():
        acc_ref[...] = jnp.zeros_like(acc_ref)

    tb, tv = out_ref.shape
    # absolute vocab index of each column of this tile
    col = jax.lax.broadcasted_iota(jnp.int32, (tb, tv), 1) + k * tv
    tgt = tgt_ref[...]                       # (tb, 1) int32

    x = out_ref[...].astype(jnp.float32)     # read native dtype, compute in f32
    # closed-form weights: no per-element log, no EUP traffic
    w = (jnp.float32(smooth)
         + jnp.where(col == tgt, jnp.float32(confidence - smooth),
                     jnp.float32(0.0))
         + jnp.where(col == padding_idx, jnp.float32(-smooth),
                     jnp.float32(0.0)))
    wx = w * x

    if deferred:
        # Deferred cross-lane reduce: VALU-only adds across 128-lane chunks;
        # the lanes->scalar XLU reduce + narrow store happen once at the end.
        partial = acc_ref[...]
        for c in range(tv // 128):           # static, fully unrolled
            partial = partial + wx[:, c * 128:(c + 1) * 128]
        acc_ref[...] = partial
    else:                                    # tv not a multiple of 128
        acc_ref[...] += wx.sum(axis=-1, keepdims=True)

    @pl.when(k == pl.num_programs(1) - 1)
    def _():
        row = acc_ref[...].sum(axis=-1, keepdims=True) + jnp.float32(const_term)
        loss_ref[...] = jnp.where(tgt == padding_idx, jnp.float32(0.0), row)


def _pick_tile(total, cap, quantum):
    """Largest divisor of `total` that is a multiple of `quantum` and <= cap;
    falls back to the full extent (always a legal Pallas block dim)."""
    cap = max(quantum, min(cap, total))
    c = cap - cap % quantum
    while c >= quantum:
        if total % c == 0:
            return c
        c -= quantum
    return total


def label_smoothing_loss(output, target, *, label_smoothing, padding_idx=0,
                         tb=None, tv=None):
    """output: [B, V] log-probs (any float dtype), target: [B] int -> [B] f32.

    Assumes 0 <= target < V (as the PyTorch gather would require).
    """
    B, V = output.shape
    assert V > 2, "tgt_vocab_size must be > 2 (smoothing divides by V - 2)"
    assert 0.0 < label_smoothing <= 1.0

    confidence = 1.0 - label_smoothing
    smooth = label_smoothing / (V - 2)
    # td == 0 contributes 0 (F.kl_div convention) -> drop conf*log(conf)
    # when confidence == 0 (label_smoothing == 1.0).
    c_log_c = confidence * math.log(confidence) if confidence > 0.0 else 0.0
    const_term = -(c_log_c + label_smoothing * math.log(smooth))

    itemsize = jnp.dtype(output.dtype).itemsize

    # ---- VMEM-budget-aware tile selection (pure HBM-bandwidth-bound) ----
    if tb is None:
        tb = _pick_tile(B, 1024, 8)
    if tv is None:
        # <=16 MiB per input buffer (x2 for double buffering => <=32 MiB),
        # capped at 4096 lanes so it also fits v7x's 64 MiB VMEM comfortably.
        budget_cols = max(128, (16 << 20) // max(1, tb * itemsize))
        tv = _pick_tile(V, min(budget_cols, 4096), 128)
    assert B % tb == 0 and (tb % 8 == 0 or tb == B)
    assert V % tv == 0 and (tv % 128 == 0 or tv == V)
    deferred = (tv % 128 == 0)
    acc_w = 128 if deferred else 1

    target2d = target.astype(jnp.int32).reshape(B, 1)

    kernel = functools.partial(
        _ls_loss_kernel,
        confidence=confidence, smooth=smooth, padding_idx=padding_idx,
        const_term=const_term, deferred=deferred)

    # raise the scoped-VMEM limit if the double-buffered tiles need it
    vmem_need = 2 * tb * tv * itemsize + tb * (acc_w + 4) * 4 + (2 << 20)

    loss = pl.pallas_call(
        kernel,
        out_shape=jax.ShapeDtypeStruct((B, 1), jnp.float32),
        grid_spec=pltpu.PrefetchScalarGridSpec(
            num_scalar_prefetch=0,
            grid=(B // tb, V // tv),                           # vocab reduction last
            in_specs=[
                pl.BlockSpec((tb, tv), lambda b, k: (b, k)),   # log-prob tile
                pl.BlockSpec((tb, 1), lambda b, k: (b, 0)),    # target ids
            ],
            out_specs=pl.BlockSpec((tb, 1), lambda b, k: (b, 0)),
            scratch_shapes=[pltpu.VMEM((tb, acc_w), jnp.float32)],
        ),
        compiler_params=pltpu.CompilerParams(
            dimension_semantics=("parallel", "arbitrary"),
            vmem_limit_bytes=max(32 << 20, vmem_need)),
    )(output, target2d)

    return loss[:, 0]


def _reference(output, target, *, label_smoothing, padding_idx=0):
    """Plain-JAX replica of the PyTorch forward, for verification."""
    B, V = output.shape
    confidence = 1.0 - label_smoothing
    smooth = label_smoothing / (V - 2)
    one_hot = jnp.full((V,), smooth, jnp.float32).at[padding_idx].set(0.0)
    true_dist = jnp.tile(one_hot[None, :], (B, 1))
    true_dist = true_dist.at[jnp.arange(B), target].set(confidence)
    true_dist = jnp.where((target == padding_idx)[:, None], 0.0, true_dist)
    kl = jnp.where(true_dist > 0,
                   true_dist * (jnp.log(jnp.where(true_dist > 0, true_dist, 1.0))
                                - output),
                   0.0)
    return -kl.sum(-1)


if __name__ == "__main__":
    B, V = 8, 2048
    label_smoothing = 0.1
    padding_idx = 0

    key = jax.random.PRNGKey(0)
    k1, k2 = jax.random.split(key)

    # "output" is expected to be log-probabilities (as fed to F.kl_div)
    logits = jax.random.normal(k1, (B, V), dtype=jnp.float32)
    logp_f32 = jax.nn.log_softmax(logits, axis=-1)
    logp_bf16 = logp_f32.astype(jnp.bfloat16)     # native model dtype, no wrapper upcast

    target = jax.random.randint(k2, (B,), 0, V, dtype=jnp.int32)
    target = target.at[0].set(padding_idx)        # exercise the padding-row mask

    # f32 input, auto-picked tiles (single vocab step at this size)
    loss_f32 = jax.block_until_ready(
        label_smoothing_loss(logp_f32, target,
                             label_smoothing=label_smoothing,
                             padding_idx=padding_idx))
    # bf16 input, forced multi-step vocab reduction (tv=512 -> 4 grid steps)
    loss_bf16 = jax.block_until_ready(
        label_smoothing_loss(logp_bf16, target,
                             label_smoothing=label_smoothing,
                             padding_idx=padding_idx, tv=512))

    ref_f32 = _reference(logp_f32, target,
                         label_smoothing=label_smoothing,
                         padding_idx=padding_idx)
    ref_bf16 = _reference(logp_bf16.astype(jnp.float32), target,
                          label_smoothing=label_smoothing,
                          padding_idx=padding_idx)

    assert loss_f32.shape == (B,)
    assert jnp.allclose(loss_f32, ref_f32, rtol=1e-4, atol=1e-4), (loss_f32, ref_f32)
    assert jnp.allclose(loss_bf16, ref_bf16, rtol=1e-3, atol=1e-3), (loss_bf16, ref_bf16)

    print("KERNEL_OK")
</pallas_src>

<mosaic_0001>
module attributes {stable_mosaic.version = 11 : i64} {
  func.func @_ls_loss_kernel(%arg0: i32, %arg1: i32, %arg2: memref<8x2048xf32, #tpu.memory_space<vmem>>, %arg3: memref<8x1xi32, #tpu.memory_space<vmem>>, %arg4: memref<8x1xf32, #tpu.memory_space<vmem>>, %arg5: memref<8x128xf32, #tpu.memory_space<vmem>>) attributes {dimension_semantics = [#tpu.dimension_semantics<parallel>, #tpu.dimension_semantics<arbitrary>], iteration_bounds = array<i64: 1, 1>, scalar_prefetch = 0 : i64, scratch_operands = 1 : i64, tpu.core_type = #tpu.core_type<tc>, window_params = [{transform_indices = @transform_0, window_bounds = array<i64: 8, 2048>}, {transform_indices = @transform_1, window_bounds = array<i64: 8, 1>}, {transform_indices = @transform_2, window_bounds = array<i64: 8, 1>}]} {
    %c0_i32 = arith.constant 0 : i32
    %0 = arith.cmpi eq, %arg1, %c0_i32 : i32
    %1 = arith.extui %0 : i1 to i32
    %c0_i32_0 = arith.constant 0 : i32
    %2 = arith.cmpi ne, %1, %c0_i32_0 : i32
    scf.if %2 {
      %cst_15 = arith.constant 0.000000e+00 : f32
      %60 = vector.broadcast %cst_15 : f32 to vector<8x128xf32>
      %c0_16 = arith.constant 0 : index
      %c0_17 = arith.constant 0 : index
      %61 = vector.load %arg5[%c0_16, %c0_17] : memref<8x128xf32, #tpu.memory_space<vmem>>, vector<8x128xf32>
      tpu.vector_store %arg5[%c0_16, %c0_17], %60 {strides = array<i32>} : memref<8x128xf32, #tpu.memory_space<vmem>>, vector<8x128xf32>,
    } else {
    }
    %3 = tpu.iota {dimensions = array<i32: 1>} : vector<8x2048xi32>
    %c2048_i32 = arith.constant 2048 : i32
    %4 = arith.muli %arg1, %c2048_i32 : i32
    %5 = vector.broadcast %4 : i32 to vector<8x2048xi32>
    %6 = arith.addi %3, %5 : vector<8x2048xi32>
    %c0 = arith.constant 0 : index
    %c0_1 = arith.constant 0 : index
    %7 = vector.load %arg3[%c0, %c0_1] : memref<8x1xi32, #tpu.memory_space<vmem>>, vector<8x1xi32>
    %c0_2 = arith.constant 0 : index
    %c0_3 = arith.constant 0 : index
    %8 = vector.load %arg2[%c0_2, %c0_3] : memref<8x2048xf32, #tpu.memory_space<vmem>>, vector<8x2048xf32>
    %9 = vector.broadcast %7 : vector<8x1xi32> to vector<8x2048xi32>
    %10 = arith.cmpi eq, %6, %9 : vector<8x2048xi32>
    %cst = arith.constant 0.8999511 : f32
    %cst_4 = arith.constant 0.000000e+00 : f32
    %11 = vector.broadcast %cst : f32 to vector<8x2048xf32>
    %12 = vector.broadcast %cst_4 : f32 to vector<8x2048xf32>
    %13 = arith.select %10, %11, %12 : vector<8x2048xi1>, vector<8x2048xf32>
    %cst_5 = arith.constant 4.8875856E-5 : f32
    %14 = vector.broadcast %cst_5 : f32 to vector<8x2048xf32>
    %15 = arith.addf %14, %13 : vector<8x2048xf32>
    %c0_i32_6 = arith.constant 0 : i32
    %16 = vector.broadcast %c0_i32_6 : i32 to vector<8x2048xi32>
    %17 = arith.cmpi eq, %6, %16 : vector<8x2048xi32>
    %cst_7 = arith.constant -4.8875856E-5 : f32
    %cst_8 = arith.constant 0.000000e+00 : f32
    %18 = vector.broadcast %cst_7 : f32 to vector<8x2048xf32>
    %19 = vector.broadcast %cst_8 : f32 to vector<8x2048xf32>
    %20 = arith.select %17, %18, %19 : vector<8x2048xi1>, vector<8x2048xf32>
    %21 = arith.addf %15, %20 : vector<8x2048xf32>
    %22 = arith.mulf %21, %8 : vector<8x2048xf32>
    %c0_9 = arith.constant 0 : index
    %c0_10 = arith.constant 0 : index
    %23 = vector.load %arg5[%c0_9, %c0_10] : memref<8x128xf32, #tpu.memory_space<vmem>>, vector<8x128xf32>
    %24 = vector.extract_strided_slice %22 {offsets = [0, 0], sizes = [8, 128], strides = [1, 1]} : vector<8x2048xf32> to vector<8x128xf32>
    %25 = arith.addf %23, %24 : vector<8x128xf32>
    %26 = vector.extract_strided_slice %22 {offsets = [0, 128], sizes = [8, 128], strides = [1, 1]} : vector<8x2048xf32> to vector<8x128xf32>
    %27 = arith.addf %25, %26 : vector<8x128xf32>
    %28 = vector.extract_strided_slice %22 {offsets = [0, 256], sizes = [8, 128], strides = [1, 1]} : vector<8x2048xf32> to vector<8x128xf32>
    %29 = arith.addf %27, %28 : vector<8x128xf32>
    %30 = vector.extract_strided_slice %22 {offsets = [0, 384], sizes = [8, 128], strides = [1, 1]} : vector<8x2048xf32> to vector<8x128xf32>
    %31 = arith.addf %29, %30 : vector<8x128xf32>
    %32 = vector.extract_strided_slice %22 {offsets = [0, 512], sizes = [8, 128], strides = [1, 1]} : vector<8x2048xf32> to vector<8x128xf32>
    %33 = arith.addf %31, %32 : vector<8x128xf32>
    %34 = vector.extract_strided_slice %22 {offsets = [0, 640], sizes = [8, 128], strides = [1, 1]} : vector<8x2048xf32> to vector<8x128xf32>
    %35 = arith.addf %33, %34 : vector<8x128xf32>
    %36 = vector.extract_strided_slice %22 {offsets = [0, 768], sizes = [8, 128], strides = [1, 1]} : vector<8x2048xf32> to vector<8x128xf32>
    %37 = arith.addf %35, %36 : vector<8x128xf32>
    %38 = vector.extract_strided_slice %22 {offsets = [0, 896], sizes = [8, 128], strides = [1, 1]} : vector<8x2048xf32> to vector<8x128xf32>
    %39 = arith.addf %37, %38 : vector<8x128xf32>
    %40 = vector.extract_strided_slice %22 {offsets = [0, 1024], sizes = [8, 128], strides = [1, 1]} : vector<8x2048xf32> to vector<8x128xf32>
    %41 = arith.addf %39, %40 : vector<8x128xf32>
    %42 = vector.extract_strided_slice %22 {offsets = [0, 1152], sizes = [8, 128], strides = [1, 1]} : vector<8x2048xf32> to vector<8x128xf32>
    %43 = arith.addf %41, %42 : vector<8x128xf32>
    %44 = vector.extract_strided_slice %22 {offsets = [0, 1280], sizes = [8, 128], strides = [1, 1]} : vector<8x2048xf32> to vector<8x128xf32>
    %45 = arith.addf %43, %44 : vector<8x128xf32>
    %46 = vector.extract_strided_slice %22 {offsets = [0, 1408], sizes = [8, 128], strides = [1, 1]} : vector<8x2048xf32> to vector<8x128xf32>
    %47 = arith.addf %45, %46 : vector<8x128xf32>
    %48 = vector.extract_strided_slice %22 {offsets = [0, 1536], sizes = [8, 128], strides = [1, 1]} : vector<8x2048xf32> to vector<8x128xf32>
    %49 = arith.addf %47, %48 : vector<8x128xf32>
    %50 = vector.extract_strided_slice %22 {offsets = [0, 1664], sizes = [8, 128], strides = [1, 1]} : vector<8x2048xf32> to vector<8x128xf32>
    %51 = arith.addf %49, %50 : vector<8x128xf32>
    %52 = vector.extract_strided_slice %22 {offsets = [0, 1792], sizes = [8, 128], strides = [1, 1]} : vector<8x2048xf32> to vector<8x128xf32>
    %53 = arith.addf %51, %52 : vector<8x128xf32>
    %54 = vector.extract_strided_slice %22 {offsets = [0, 1920], sizes = [8, 128], strides = [1, 1]} : vector<8x2048xf32> to vector<8x128xf32>
    %55 = arith.addf %53, %54 : vector<8x128xf32>
    %c0_11 = arith.constant 0 : index
    %c0_12 = arith.constant 0 : index
    %56 = vector.load %arg5[%c0_11, %c0_12] : memref<8x128xf32, #tpu.memory_space<vmem>>, vector<8x128xf32>
    tpu.vector_store %arg5[%c0_11, %c0_12], %55 {strides = array<i32>} : memref<8x128xf32, #tpu.memory_space<vmem>>, vector<8x128xf32>,
    %c0_i32_13 = arith.constant 0 : i32
    %57 = arith.cmpi eq, %arg1, %c0_i32_13 : i32
    %58 = arith.extui %57 : i1 to i32
    %c0_i32_14 = arith.constant 0 : i32
    %59 = arith.cmpi ne, %58, %c0_i32_14 : i32
    scf.if %59 {
      %c0_15 = arith.constant 0 : index
      %c0_16 = arith.constant 0 : index
      %60 = vector.load %arg5[%c0_15, %c0_16] : memref<8x128xf32, #tpu.memory_space<vmem>>, vector<8x128xf32>
      %cst_17 = arith.constant dense<0.000000e+00> : vector<8xf32>
      %61 = vector.multi_reduction <add>, %60, %cst_17 [1] : vector<8x128xf32> to vector<8xf32>
      %62 = vector.shape_cast %61 : vector<8xf32> to vector<8x1xf32>
      %cst_18 = arith.constant 1.08744717 : f32
      %63 = vector.broadcast %cst_18 : f32 to vector<8x1xf32>
      %64 = arith.addf %62, %63 : vector<8x1xf32>
      %c0_i32_19 = arith.constant 0 : i32
      %65 = vector.broadcast %c0_i32_19 : i32 to vector<8x1xi32>
      %66 = arith.cmpi eq, %7, %65 : vector<8x1xi32>
      %cst_20 = arith.constant 0.000000e+00 : f32
      %67 = vector.broadcast %cst_20 : f32 to vector<8x1xf32>
      %68 = arith.select %66, %67, %64 : vector<8x1xi1>, vector<8x1xf32>
      %c0_21 = arith.constant 0 : index
      %c0_22 = arith.constant 0 : index
      %69 = vector.load %arg4[%c0_21, %c0_22] : memref<8x1xf32, #tpu.memory_space<vmem>>, vector<8x1xf32>
      tpu.vector_store %arg4[%c0_21, %c0_22], %68 {strides = array<i32>} : memref<8x1xf32, #tpu.memory_space<vmem>>, vector<8x1xf32>,
    } else {
    }
    return
  }
  func.func @transform_0(%arg0: i32, %arg1: i32) -> (i32, i32) {
    %c0_i32 = arith.constant 0 : i32
    return %arg0, %arg1 : i32, i32
  }
  func.func @transform_1(%arg0: i32, %arg1: i32) -> (i32, i32) {
    %c0_i32 = arith.constant 0 : i32
    %c0_i32_0 = arith.constant 0 : i32
    return %arg0, %c0_i32 : i32, i32
  }
  func.func @transform_2(%arg0: i32, %arg1: i32) -> (i32, i32) {
    %c0_i32 = arith.constant 0 : i32
    %c0_i32_0 = arith.constant 0 : i32
    return %arg0, %c0_i32 : i32, i32
  }
}

</mosaic_0001>

<bundles_post_ra>
// kernel: tpu_custom_call.1
= control target key start
LH: loop header
LB: loop body
LE: loop exit
PB: predicated region body
PF: predicated region fallthrough
CT: control target
= control target key end

     0   :  { %7 = vsyncpa [#allocation4], 0  ;;  %s257_s9 = smov [#allocation3]   ;;  %s351_s0 = inlined_call_operand.hbm [shape: f32[8,2048], index: 0, kind: input, shape index: {}]   ;;  %s352_s1 = inlined_call_operand.vmem [shape: s32[8,1], index: 1, kind: input, shape index: {}]   ;;  %s353_s2 = inlined_call_operand.vmem [shape: f32[8,1], index: 2, kind: output, shape index: {}]  }
   0x1   :  { %s14_s10 = sshll.u32 %s257_s9, 4  ;;  %s233_s13 = scalar_lea.hbm %s351_s0, 2048  ;;  %s15_s10 = int_to_ptr.vmem [resolvable:$true] %s14_s10 }
   0x2   :  { %p234_p0 = scmp.ne.s32.totalorder %s351_s0, %s233_s13  ;;  %p237_p1 = scmp.lt.u32.totalorder %s233_s13, %s351_s0 }
   0x4   :  { %p239_p2 = pnand %p237_p1, %p234_p0 }
   0x6   :  { %242 = shalt.err (!%p239_p2)
}
   0x7   :  { %s243_s18 = scalar_lea.vmem %s15_s10, 2048  ;;  %p248_p4 = scmp.lt.s32.totalorder %s15_s10, %s15_s10 }
   0x8   :  { %p244_p3 = scmp.ne.s32.totalorder %s15_s10, %s243_s18  ;;  %p249_p5 = scmp.lt.s32.totalorder %s243_s18, %s243_s18 }
   0xa   :  { %p250_p6 = por %p249_p5, %p248_p4 }
   0xc   :  { %p251_p7 = pnand %p250_p6, %p244_p3 }
   0xe   :  { %254 = shalt.err (!%p251_p7)
}
   0xf   :  { %17 = dma.hbm_to_vmem [thread:$0]  %s351_s0, 2048, %s15_s10, [#allocation4]  }
  0x10   :  { %255 = dma.done.wait [#allocation4], 2048  }
  0x11   :  { %256 = vsyncadd [#allocation4], 4294965248  ;;  %v258_v0 = vmov 0   ;;  %v290_v1 = vld [vmem:[%s352_s1] sm:$0xff]  ;;  %v28_v2 = vlaneseq  ;;  %v259_v8 = vmov 0.0   ;;  %v65_v20 = vld [vmem:[#allocation3 + $0x8] sm:$0xff] }
  0x12   :  { %232 = vset.pattern.permute.xlu0 %v258_v0  ;;  %v64_v15 = vld [vmem:[#allocation3] sm:$0xff]  ;;  %v66_v25 = vld [vmem:[#allocation3 + $0x10] sm:$0xff]  ;;  %v67_v31 = vld [vmem:[#allocation3 + $0x18] sm:$0xff] }
  0x13   :  { %81 = vperm.xlu0 %232, %v290_v1   ;;  %v293_v3 = vand.u32 127, %v28_v2  ;;  %v68_v37 = vld [vmem:[#allocation3 + $0x20] sm:$0xff]  ;;  %v69_v43 = vld [vmem:[#allocation3 + $0x28] sm:$0xff]  ;;  %v70_v49 = vld [vmem:[#allocation3 + $0x30] sm:$0xff] }
  0x14   :  { %v71_v55 = vld [vmem:[#allocation3 + $0x38] sm:$0xff]  ;;  %v72_v61 = vld [vmem:[#allocation3 + $0x40] sm:$0xff] }
  0x15   :  { %v30_v5 = vadd.s32 128, %v293_v3  ;;  %v31_v6 = vadd.s32 256, %v293_v3  ;;  %vm131_vm1 = vcmp.eq.s32.totalorder %v293_v3, 0  ;;  %v32_v7 = vadd.s32 384, %v293_v3 }
  0x16   :  { %v33_v10 = vadd.s32 512, %v293_v3  ;;  %v147_v11 = vsel %vm131_vm1, -4.8875856e-05, %v259_v8  ;;  %v34_v14 = vadd.s32 640, %v293_v3  ;;  %v35_v18 = vadd.s32 768, %v293_v3 }
  0x17   :  { %v36_v22 = vadd.s32 896, %v293_v3  ;;  %v37_v27 = vadd.s32 1024, %v293_v3  ;;  %v38_v30 = vadd.s32 1152, %v293_v3  ;;  %v39_v36 = vadd.s32 1280, %v293_v3 }
  0x18   :  { %v40_v42 = vadd.s32 1408, %v293_v3  ;;  %v41_v48 = vadd.s32 1536, %v293_v3  ;;  %v42_v54 = vadd.s32 1664, %v293_v3  ;;  %v43_v60 = vadd.s32 1792, %v293_v3 }
  0x19   :  { %vm220_vm1 = vcmp.eq.s32.totalorder %v290_v1, 0 }
  0x92   :  { %v295_v4 = vpop.permute.xlu0 %81 }
  0x93   :  { %vm83_vm0 = vcmp.eq.s32.totalorder %v293_v3, %v295_v4  ;;  %vm84_vm2 = vcmp.eq.s32.totalorder %v30_v5, %v295_v4  ;;  %vm85_vm3 = vcmp.eq.s32.totalorder %v31_v6, %v295_v4  ;;  %vm86_vm4 = vcmp.eq.s32.totalorder %v32_v7, %v295_v4  ;;  %v73_v6 = vld [vmem:[#allocation3 + $0x48] sm:$0xff] }
  0x94   :  { %v99_v9 = vsel %vm83_vm0, 0.8999511, %v259_v8  ;;  %v100_v12 = vsel %vm84_vm2, 0.8999511, %v259_v8  ;;  %v101_v16 = vsel %vm85_vm3, 0.8999511, %v259_v8  ;;  %vm87_vm5 = vcmp.eq.s32.totalorder %v33_v10, %v295_v4 }
  0x95   :  { %v115_v13 = vadd.f32 4.8875856e-05, %v99_v9  ;;  %v116_v19 = vadd.f32 4.8875856e-05, %v100_v12  ;;  %v102_v21 = vsel %vm86_vm4, 0.8999511, %v259_v8  ;;  %vm88_vm6 = vcmp.eq.s32.totalorder %v34_v14, %v295_v4 }
  0x96   :  { %v117_v23 = vadd.f32 4.8875856e-05, %v101_v16  ;;  %v103_v26 = vsel %vm87_vm5, 0.8999511, %v259_v8  ;;  %vm89_vm7 = vcmp.eq.s32.totalorder %v35_v18, %v295_v4  ;;  %v118_v28 = vadd.f32 4.8875856e-05, %v102_v21 }
  0x97   :  { %v163_v17 = vadd.f32 %v147_v11, %v115_v13  ;;  %v180_v29 = vmul.f32 %v116_v19, %v65_v20  ;;  %v104_v32 = vsel %vm88_vm6, 0.8999511, %v259_v8  ;;  %vm90_vm8 = vcmp.eq.s32.totalorder %v36_v22, %v295_v4  ;;  %v74_v12 = vld [vmem:[#allocation3 + $0x50] sm:$0xff]  ;;  %v76_v21 = vld [vmem:[#allocation3 + $0x60] sm:$0xff] }
  0x98   :  { %v119_v33 = vadd.f32 4.8875856e-05, %v103_v26  ;;  %v181_v34 = vmul.f32 %v117_v23, %v66_v25  ;;  %v105_v38 = vsel %vm89_vm7, 0.8999511, %v259_v8  ;;  %vm91_vm9 = vcmp.eq.s32.totalorder %v37_v27, %v295_v4  ;;  %v77_v26 = vld [vmem:[#allocation3 + $0x68] sm:$0xff] }
  0x99   :  { %v179_v24 = vmul.f32 %v163_v17, %v64_v15  ;;  %v120_v39 = vadd.f32 4.8875856e-05, %v104_v32  ;;  %v182_v40 = vmul.f32 %v118_v28, %v67_v31  ;;  %v106_v44 = vsel %vm90_vm8, 0.8999511, %v259_v8  ;;  %v75_v17 = vld [vmem:[#allocation3 + $0x58] sm:$0xff]  ;;  %v78_v31 = vld [vmem:[#allocation3 + $0x70] sm:$0xff] }
  0x9a   :  { %vm92_vm10 = vcmp.eq.s32.totalorder %v38_v30, %v295_v4  ;;  %v121_v45 = vadd.f32 4.8875856e-05, %v105_v38  ;;  %v183_v46 = vmul.f32 %v119_v33, %v68_v37  ;;  %v107_v50 = vsel %vm91_vm9, 0.8999511, %v259_v8 }
  0x9b   :  { %v197_v35 = vadd.f32 %v180_v29, %v179_v24  ;;  %vm93_vm11 = vcmp.eq.s32.totalorder %v39_v36, %v295_v4  ;;  %v122_v51 = vadd.f32 4.8875856e-05, %v106_v44  ;;  %v184_v52 = vmul.f32 %v120_v39, %v69_v43 }
  0x9c   :  { %v108_v56 = vsel %vm92_vm10, 0.8999511, %v259_v8  ;;  %vm94_vm12 = vcmp.eq.s32.totalorder %v40_v42, %v295_v4  ;;  %v123_v57 = vadd.f32 4.8875856e-05, %v107_v50  ;;  %v185_v58 = vmul.f32 %v121_v45, %v70_v49 }
  0x9d   :  { %v198_v41 = vadd.f32 %v197_v35, %v181_v34  ;;  %v109_v62 = vsel %vm93_vm11, 0.8999511, %v259_v8  ;;  %vm95_vm13 = vcmp.eq.s32.totalorder %v41_v48, %v295_v4  ;;  %v124_v63 = vadd.f32 4.8875856e-05, %v108_v56 }
  0x9e   :  { %v186_v0 = vmul.f32 %v122_v51, %v71_v55  ;;  %v44_v5 = vadd.s32 1920, %v293_v3  ;;  %v110_v7 = vsel %vm94_vm12, 0.8999511, %v259_v8  ;;  %vm96_vm14 = vcmp.eq.s32.totalorder %v42_v54, %v295_v4 }
  0x9f   :  { %v199_v47 = vadd.f32 %v198_v41, %v182_v40  ;;  %v125_v9 = vadd.f32 4.8875856e-05, %v109_v62  ;;  %v187_v10 = vmul.f32 %v123_v57, %v72_v61  ;;  %v111_v13 = vsel %vm95_vm13, 0.8999511, %v259_v8 }
  0xa0   :  { %vm97_vm15 = vcmp.eq.s32.totalorder %v43_v60, %v295_v4  ;;  %v126_v14 = vadd.f32 4.8875856e-05, %v110_v7  ;;  %v188_v15 = vmul.f32 %v124_v63, %v73_v6  ;;  %v112_v18 = vsel %vm96_vm14, 0.8999511, %v259_v8 }
  0xa1   :  { %v200_v53 = vadd.f32 %v199_v47, %v183_v46  ;;  %vm98_vm0 = vcmp.eq.s32.totalorder %v44_v5, %v295_v4  ;;  %v127_v3 = vadd.f32 4.8875856e-05, %v111_v13  ;;  %v189_v19 = vmul.f32 %v125_v9, %v74_v12  ;;  %v79_v4 = vld [vmem:[#allocation3 + $0x78] sm:$0xff] }
  0xa2   :  { %v113_v22 = vsel %vm97_vm15, 0.8999511, %v259_v8  ;;  %v128_v23 = vadd.f32 4.8875856e-05, %v112_v18  ;;  %v190_v24 = vmul.f32 %v126_v14, %v75_v17  ;;  %v114_v27 = vsel %vm98_vm0, 0.8999511, %v259_v8 }
  0xa3   :  { %v201_v59 = vadd.f32 %v200_v53, %v184_v52  ;;  %v129_v28 = vadd.f32 4.8875856e-05, %v113_v22  ;;  %v191_v29 = vmul.f32 %v127_v3, %v76_v21  ;;  %v130_v32 = vadd.f32 4.8875856e-05, %v114_v27 }
  0xa4   :  { %v192_v33 = vmul.f32 %v128_v23, %v77_v26  ;;  %vm222_vm2 = vcmask 7168  }
  0xa5   :  { %v202_v2 = vadd.f32 %v201_v59, %v185_v58  ;;  %v193_v35 = vmul.f32 %v129_v28, %v78_v31  ;;  %v194_v37 = vmul.f32 %v130_v32, %v79_v4 }
  0xa7   :  { %v203_v11 = vadd.f32 %v202_v2, %v186_v0 }
  0xa9   :  { %v204_v16 = vadd.f32 %v203_v11, %v187_v10 }
  0xab   :  { %v205_v20 = vadd.f32 %v204_v16, %v188_v15 }
  0xad   :  { %v206_v25 = vadd.f32 %v205_v20, %v189_v19 }
  0xaf   :  { %v207_v30 = vadd.f32 %v206_v25, %v190_v24 }
  0xb1   :  { %v208_v34 = vadd.f32 %v207_v30, %v191_v29 }
  0xb3   :  { %v209_v36 = vadd.f32 %v208_v34, %v192_v33 }
  0xb5   :  { %v210_v38 = vadd.f32 %v209_v36, %v193_v35 }
  0xb7   :  { %v211_v39 = vadd.f32 %v210_v38, %v194_v37 }
  0xb9   :  { %217 = vadd.xlane.f32.xlu0 %v211_v39 }
 0x146   :  { %v218_v40 = vpop.xlane.xlu0 %217 }
 0x147   :  { %v219_v41 = vadd.f32 1.0874472, %v218_v40 }
 0x149   :  { %v221_v8 = vsel %vm220_vm1, 0.0, %v219_v41 }
 0x14a   :  { %223 = vst.msk [vmem:[%s353_s2] sm:$0xff] %vm222_vm2, %v221_v8 }
 0x14b   :  { %228 = vsyncpa [#allocation4], 1 }

</bundles_post_ra>
